<compile_context>
chip_gen: v5e
topology: v5e:2x2
jax: 0.10.0
libtpu: 0.0.40
codegen_flags: <defaults>
</compile_context>

<pallas_src>
import functools

import jax
import jax.numpy as jnp
from jax.experimental import pallas as pl
from jax.experimental.pallas import tpu as pltpu


def _round_up(v, m):
    return ((v + m - 1) // m) * m


def _vmem_bytes_estimate(bt, K, N, x_itemsize, w_itemsize):
    """Rough lane-padded, double-buffered VMEM footprint of one grid step."""
    kp = _round_up(max(K, 1), 128)
    npad = _round_up(max(N, 1), 128)
    x_buf = 2 * bt * kp * x_itemsize                     # pipelined x tiles
    o_buf = 2 * bt * npad * 4                            # pipelined f32 out tiles
    w_buf = 2 * _round_up(max(K, 1), 8) * npad * w_itemsize  # resident weights
    b_buf = 2 * 8 * npad * 4                             # resident bias
    return x_buf + o_buf + w_buf + b_buf


def linear_kernel(x_ref, w_ref, b_ref, o_ref, *, compute_dtype):
    x = x_ref[...]
    if compute_dtype is not None:
        # In-kernel cast: rides idle VPU slots, avoids an extra HBM pass over x.
        x = x.astype(compute_dtype)
    acc = jnp.dot(x, w_ref[...], preferred_element_type=jnp.float32)
    o_ref[...] = (acc + b_ref[...]).astype(o_ref.dtype)


def linear_regression_forward(x, w, b, *, batch_tile=1024, compute_dtype=None):
    """Pallas TPU implementation of LinearRegressionModel.forward.

    x: [B, in_features]           (left in its HBM dtype; cast per-tile in-kernel)
    w: [in_features, out_features] (PyTorch weight [out, in], pre-transposed)
    b: [out_features] or [1, out_features]
    compute_dtype: e.g. jnp.bfloat16 for bf16 MXU operands (f32 accumulation).
    """
    B, K = x.shape
    Kw, N = w.shape
    assert Kw == K, "weight/in_features mismatch"

    if b.ndim == 1:
        b = b.reshape(1, -1)
    b = b.astype(jnp.float32)
    if compute_dtype is not None:
        w = w.astype(compute_dtype)  # tiny, one-time; x is cast in-kernel

    # ---- batch-tile selection -------------------------------------------------
    VMEM_BUDGET = 14 * 1024 * 1024  # under v5e's 16 MiB scoped default; fine on v6e/v7x

    bt = _round_up(max(8, min(batch_tile, B)), 8)
    if B > 8:
        # v7x megacore: guarantee >= 2 parallel grid steps so both TCs get work
        # (harmless on single-TC v5e/v6e).
        bt = min(bt, _round_up(pl.cdiv(B, 2), 8))

    x_isz = jnp.dtype(x.dtype).itemsize
    w_isz = jnp.dtype(w.dtype).itemsize
    while bt > 8 and _vmem_bytes_estimate(bt, K, N, x_isz, w_isz) > VMEM_BUDGET:
        bt = _round_up(bt // 2, 8)

    grid = (pl.cdiv(B, bt),)

    kernel = functools.partial(linear_kernel, compute_dtype=compute_dtype)

    out = pl.pallas_call(
        kernel,
        out_shape=jax.ShapeDtypeStruct((B, N), jnp.float32),
        grid_spec=pltpu.PrefetchScalarGridSpec(
            num_scalar_prefetch=0,
            grid=grid,
            in_specs=[
                # Full-dim K block: no host padding of x, never OOB along the
                # contraction axis (Mosaic lane-pads K inside VMEM).
                pl.BlockSpec((bt, K), lambda i: (i, 0)),
                # Constant index maps: W and b fetched once, stay VMEM-resident.
                pl.BlockSpec((K, N), lambda i: (0, 0)),
                pl.BlockSpec((1, N), lambda i: (0, 0)),
            ],
            # Full-dim N output block: writes exactly B*N*4 bytes (no padded
            # lanes, no post-kernel slice pass). Partial last batch tile is
            # masked on store.
            out_specs=pl.BlockSpec((bt, N), lambda i: (i, 0)),
        ),
        compiler_params=pltpu.CompilerParams(
            # Batch axis is fully parallel -> shards across both TCs on v7x.
            dimension_semantics=("parallel",),
        ),
    )(x, w, b)

    return out


if __name__ == "__main__":
    key = jax.random.PRNGKey(0)
    k_w, k_b, k_x, k_x2 = jax.random.split(key, 4)

    # --- Small-shape f32 correctness check, matching the PyTorch module:
    # LinearRegressionModel(input_dim=32, output_dim=16) on a batch of 8.
    batch, input_dim, output_dim = 8, 32, 16
    bound = 1.0 / jnp.sqrt(input_dim)
    w = jax.random.uniform(k_w, (input_dim, output_dim), jnp.float32, -bound, bound)
    b = jax.random.uniform(k_b, (1, output_dim), jnp.float32, -bound, bound)
    x = jax.random.normal(k_x, (batch, input_dim), jnp.float32)

    out = jax.block_until_ready(linear_regression_forward(x, w, b))
    ref = x @ w + b
    assert out.shape == (batch, output_dim)
    assert jnp.allclose(out, ref, atol=1e-5, rtol=1e-5), "f32 mismatch vs reference"

    # --- Larger batch on the perf path: unaligned K/N (no host padding, no
    # post-slice), >= 2 parallel grid steps, bf16 operands cast in-kernel with
    # f32 MXU accumulation.
    B2, K2, N2 = 512, 300, 10
    bound2 = 1.0 / jnp.sqrt(K2)
    w2 = jax.random.uniform(k_w, (K2, N2), jnp.float32, -bound2, bound2)
    b2 = jax.random.uniform(k_b, (1, N2), jnp.float32, -bound2, bound2)
    x2 = jax.random.normal(k_x2, (B2, K2), jnp.float32)

    out2 = jax.block_until_ready(
        linear_regression_forward(x2, w2, b2, compute_dtype=jnp.bfloat16))
    ref2 = (x2.astype(jnp.bfloat16).astype(jnp.float32)
            @ w2.astype(jnp.bfloat16).astype(jnp.float32)) + b2
    assert out2.shape == (B2, N2)
    assert jnp.allclose(out2, ref2, atol=1e-2, rtol=1e-2), "bf16 mismatch vs reference"

    print("KERNEL_OK")
</pallas_src>

<mosaic_0001>
module attributes {stable_mosaic.version = 11 : i64} {
  func.func @linear_kernel(%arg0: i32, %arg1: memref<8x32xf32, #tpu.memory_space<vmem>>, %arg2: memref<32x16xf32, #tpu.memory_space<vmem>>, %arg3: memref<1x16xf32, #tpu.memory_space<vmem>>, %arg4: memref<8x16xf32, #tpu.memory_space<vmem>>) attributes {dimension_semantics = [#tpu.dimension_semantics<parallel>], iteration_bounds = array<i64: 1>, scalar_prefetch = 0 : i64, scratch_operands = 0 : i64, tpu.core_type = #tpu.core_type<tc>, window_params = [{transform_indices = @transform_0, window_bounds = array<i64: 8, 32>}, {pipeline_mode = #tpu.pipeline_mode<synchronous>, transform_indices = @transform_1, window_bounds = array<i64: 32, 16>}, {pipeline_mode = #tpu.pipeline_mode<synchronous>, transform_indices = @transform_2, window_bounds = array<i64: 1, 16>}, {transform_indices = @transform_3, window_bounds = array<i64: 8, 16>}]} {
    %c0 = arith.constant 0 : index
    %c0_0 = arith.constant 0 : index
    %0 = vector.load %arg1[%c0, %c0_0] : memref<8x32xf32, #tpu.memory_space<vmem>>, vector<8x32xf32>
    %c0_1 = arith.constant 0 : index
    %c0_2 = arith.constant 0 : index
    %1 = vector.load %arg2[%c0_1, %c0_2] : memref<32x16xf32, #tpu.memory_space<vmem>>, vector<32x16xf32>
    %cst = arith.constant dense<0.000000e+00> : vector<8x16xf32>
    %2 = tpu.matmul %0, %1, %cst {dimension_numbers = #tpu.dot_dimension_numbers<[1], [0], [0], [1], [0, 0, 1, 1], [], []>} : vector<8x32xf32>, vector<32x16xf32>, vector<8x16xf32> -> vector<8x16xf32>
    %c0_3 = arith.constant 0 : index
    %c0_4 = arith.constant 0 : index
    %3 = vector.load %arg3[%c0_3, %c0_4] : memref<1x16xf32, #tpu.memory_space<vmem>>, vector<1x16xf32>
    %4 = vector.broadcast %3 : vector<1x16xf32> to vector<8x16xf32>
    %5 = arith.addf %2, %4 : vector<8x16xf32>
    %c0_5 = arith.constant 0 : index
    %c0_6 = arith.constant 0 : index
    %6 = vector.load %arg4[%c0_5, %c0_6] : memref<8x16xf32, #tpu.memory_space<vmem>>, vector<8x16xf32>
    tpu.vector_store %arg4[%c0_5, %c0_6], %5 {strides = array<i32>} : memref<8x16xf32, #tpu.memory_space<vmem>>, vector<8x16xf32>,
    return
  }
  func.func @transform_0(%arg0: i32) -> (i32, i32) {
    %c0_i32 = arith.constant 0 : i32
    %c0_i32_0 = arith.constant 0 : i32
    return %arg0, %c0_i32 : i32, i32
  }
  func.func @transform_1(%arg0: i32) -> (i32, i32) {
    %c0_i32 = arith.constant 0 : i32
    %c0_i32_0 = arith.constant 0 : i32
    %c0_i32_1 = arith.constant 0 : i32
    return %c0_i32, %c0_i32_0 : i32, i32
  }
  func.func @transform_2(%arg0: i32) -> (i32, i32) {
    %c0_i32 = arith.constant 0 : i32
    %c0_i32_0 = arith.constant 0 : i32
    %c0_i32_1 = arith.constant 0 : i32
    return %c0_i32, %c0_i32_0 : i32, i32
  }
  func.func @transform_3(%arg0: i32) -> (i32, i32) {
    %c0_i32 = arith.constant 0 : i32
    %c0_i32_0 = arith.constant 0 : i32
    return %arg0, %c0_i32 : i32, i32
  }
}

</mosaic_0001>

<bundles_post_ra>
// kernel: tpu_custom_call.1
= control target key start
LH: loop header
LB: loop body
LE: loop exit
PB: predicated region body
PF: predicated region fallthrough
CT: control target
= control target key end

     0   :  { %s137_s0 = inlined_call_operand.vmem [shape: f32[8,32], index: 0, kind: input, shape index: {}]   ;;  %s138_s1 = inlined_call_operand.vmem [shape: f32[32,16], index: 1, kind: input, shape index: {}]   ;;  %s139_s2 = inlined_call_operand.vmem [shape: f32[1,16], index: 2, kind: input, shape index: {}]   ;;  %s140_s3 = inlined_call_operand.hbm [shape: f32[8,16], index: 3, kind: output, shape index: {}]  }
   0x1   :  { %v19_v0 = vld [vmem:[%s138_s1 + $0x18] sm:$0xff]  ;;  %v18_v1 = vld [vmem:[%s138_s1 + $0x10] sm:$0xff]  ;;  %v17_v2 = vld [vmem:[%s138_s1 + $0x8] sm:$0xff] }
   0x2   :  { %40 = vmatpush.msra.mxu0 %v19_v0 }
   0x3   :  { %8 = vsyncpa [#allocation3], 0  ;;  %v16_v3 = vld [vmem:[%s138_s1] sm:$0xff]  ;;  %vm24_vm0 = vcmask 261120   ;;  %s95_s24 = smov [#allocation2]   ;;  %s57_s28 = sshll.u32 %s140_s3, 4  ;;  %s58_s28 = int_to_ptr.hbm [resolvable:$true] %s57_s28 }
   0x4   :  { %41 = vmatpush.msra.mxu0 %v18_v1  ;;  %v15_v4 = vld [vmem:[%s137_s0] sm:$0xff]  ;;  %s55_s25 = sshll.u32 %s95_s24, 4  ;;  %vm48_vm1 = vcmask 130048   ;;  %s56_s25 = int_to_ptr.vmem [resolvable:$true] %s55_s25 }
   0x5   :  { %v68_v5 = vld [vmem:[%s139_s2] ss:$0 sm:$0xff] }
   0x6   :  { %42 = vmatpush.msra.mxu0 %v17_v2 }
   0x8   :  { %43 = vmatpush.msra.mxu0 %v16_v3 }
   0x9   :  { %66 = vmatmul.msk.f32.vlgmr.msra.gmra.mxu0 %vm24_vm0, %v15_v4 }
  0x86   :  { %v45_v6 = vpop.f32.mrf.mxu0 }
  0x87   :  { %v46_v7 = vadd.f32 %v68_v5, %v45_v6 }
  0x89   :  { %49 = vst.msk [vmem:[#allocation2] sm:$0xff] %vm48_vm1, %v46_v7 }
  0x8a   :  { %60 = dma.vmem_to_hbm [thread:$0]  %s56_s25, 128, %s58_s28, [#allocation3]  }
  0x8b   :  { %93 = dma.done.wait [#allocation3], 128  }
  0x8c   :  { %94 = vsyncadd [#allocation3], 4294967168 }
  0x8d   :  { %65 = vsyncpa [#allocation3], 1 }

</bundles_post_ra>
